<compile_context>
chip_gen: v7x
topology: tpu7x:2x2x1
jax: 0.10.0
libtpu: 0.0.40
codegen_flags: <defaults>
</compile_context>

<pallas_src>
import functools
import math

import jax
import jax.numpy as jnp
from jax import lax
from jax.experimental import pallas as pl
from jax.experimental.pallas import tpu as pltpu

_LANE = 128
_NEG_INF = -1e30


def _attn_kernel(q_ref, k_ref, v_ref, o_ref, *, valid_len, compute_dtype,
                 exp_dtype):
    # q_ref: (Hb, ch, Tq)   k_ref / v_ref: (Hb, ch, Tp)   o_ref: (Hb, ch, Tq)
    ch = q_ref.shape[1]
    t_pad = k_ref.shape[-1]

    # Legacy dual scaling (q*s)·(k*s) with s = ch**-0.25 folded into a single
    # multiply on q: scale2 = s*s = 1/sqrt(ch).  The multiply is done in f32
    # (exact for f32/bf16, and keeps fp16 inputs safe), then cast to the MXU
    # operand dtype (bf16 -> single-pass MXU).
    scale2 = 1.0 / math.sqrt(ch)
    q = (q_ref[...].astype(jnp.float32) * scale2).astype(compute_dtype)
    k = k_ref[...].astype(compute_dtype)

    # scores[h, t, s] = sum_c q[h, c, t] * k[h, c, s]  -- contract the sublane
    # (channel) axis of both operands directly (no XLU transposes); f32 acc.
    scores = lax.dot_general(
        q, k,
        dimension_numbers=(((1,), (1,)), ((0,), (0,))),
        preferred_element_type=jnp.float32)                  # (Hb, Tq, Tp) f32

    # Mask padded key columns so they do not perturb the softmax.  Broadcast a
    # (1, 1, Tp) iota instead of materializing a score-sized int32 tensor.
    if valid_len < t_pad:
        col = lax.broadcasted_iota(jnp.int32, (1, 1, t_pad), 2)
        scores = jnp.where(col < valid_len, scores, _NEG_INF)

    # Softmax over keys: mask / max / subtract in f32, exp in exp_dtype (bf16
    # on v6e/v7x), row sum accumulated in f32.  The 1/sum normalization is
    # deferred past the PV matmul (T*T multiplies -> ch*T multiplies).
    m = jnp.max(scores, axis=-1, keepdims=True)              # (Hb, Tq, 1) f32
    e = jnp.exp((scores - m).astype(exp_dtype))              # (Hb, Tq, Tp)
    l = jnp.sum(e, axis=-1, dtype=jnp.float32)               # (Hb, Tq)   f32

    # a_unnorm[h, c, t] = sum_s v[h, c, s] * e[h, t, s]
    a = lax.dot_general(
        v_ref[...].astype(compute_dtype), e.astype(compute_dtype),
        dimension_numbers=(((2,), (2,)), ((0,), (0,))),
        preferred_element_type=jnp.float32)                  # (Hb, ch, Tq) f32

    inv_l = pl.reciprocal(l, approx=True)                    # EUP vrcp
    o_ref[...] = (a * inv_l[:, None, :]).astype(o_ref.dtype)


def _tpu_vmem_and_bf16_eup():
    """Returns (per-core VMEM bytes, whether the EUP/VPU have native bf16)."""
    kind = ""
    try:
        kind = jax.devices()[0].device_kind.lower()
    except Exception:
        pass
    # v2-v5 (incl. v5e/v5p) lack bf16 EUP/VPU; v6e/v7x have it.
    eup_bf16 = not any(v in kind for v in ("v2", "v3", "v4", "v5"))
    try:
        vmem = int(pltpu.get_tpu_info().vmem_capacity_bytes)
    except Exception:
        vmem = (64 << 20) if "7" in kind else (128 << 20)
    return vmem, eup_bf16


def shared_qkv_attention_legacy(qkv, n_heads):
    """qkv: (bs, 3*n_heads*ch, length) -> (bs, n_heads*ch, length)."""
    # TODO(synk): return_kv=True variant (also returning k, v) not implemented;
    # the module default is return_kv=False.
    bs, width, length = qkv.shape
    assert width % (3 * n_heads) == 0
    ch = width // (3 * n_heads)
    B = bs * n_heads
    dtype = qkv.dtype
    itemsize = jnp.dtype(dtype).itemsize

    # (bs, 3*H*ch, T) -> (B, 3, ch, T); per-head width layout is [q | k | v].
    qkv4 = qkv.reshape(B, 3, ch, length)

    # Lane-dense length: pad up to a multiple of 128 (masked in the kernel).
    # TODO(synk): for large, non-128-aligned lengths handle the ragged last key
    # tile inside the kernel instead of this full-tensor pad + trailing slice.
    t_pad = ((length + _LANE - 1) // _LANE) * _LANE
    if t_pad != length:
        qkv4 = jnp.pad(qkv4, ((0, 0), (0, 0), (0, 0), (0, t_pad - length)))

    # Generation-aware dtype / VMEM policy.
    vmem_physical, eup_bf16 = _tpu_vmem_and_bf16_eup()
    compute_dtype = (jnp.bfloat16
                     if (dtype == jnp.float32 or dtype == jnp.bfloat16)
                     else dtype)
    exp_dtype = (jnp.bfloat16 if (eup_bf16 and compute_dtype == jnp.bfloat16)
                 else jnp.float32)
    e_bytes = jnp.dtype(exp_dtype).itemsize

    # Leave ~20% of physical VMEM for compiler-internal scratch; the tile
    # budget sits a further margin below the requested limit.
    ceiling = (vmem_physical * 4) // 5       # ~102 MiB (v5e/v6e), ~51 MiB (v7x)
    budget = max(ceiling - (6 << 20), 16 << 20)

    def _block_bytes(hb, tq):
        return (2 * hb * ch * tq * itemsize          # q blocks (x2 buffers)
                + 4 * hb * ch * t_pad * itemsize     # k + v blocks (x2 each)
                + 2 * hb * ch * tq * itemsize        # out blocks (x2 buffers)
                + hb * tq * t_pad * 4                # f32 scores
                + hb * tq * t_pad * e_bytes          # exp temporary
                + hb * ch * tq * 4)                  # f32 PV accumulator

    # Tile selection: batch heads (Hb) and tile queries (Tq), keeping the
    # total per-step footprint under the budget.  Keep >= 2 head-block grid
    # iterations so the parallel axis can shard across TensorCores (v7x).
    hb = next(h for h in (8, 4, 2, 1) if B % h == 0)
    while hb > 1 and B // hb < 2:
        hb //= 2
    tq = next(t for t in (512, 256, 128) if t_pad % t == 0)
    while hb > 1 and _block_bytes(hb, tq) > budget:
        hb //= 2
    while tq > 128 and _block_bytes(hb, tq) > budget:
        tq //= 2
    # TODO(synk): if even (hb=1, tq=128) overflows the budget (very long
    # sequences), a key-tiled online-softmax (flash-style) path is needed.

    grid = (B // hb, t_pad // tq)   # q-tile axis innermost: K/V block stays put

    q_spec = pl.BlockSpec((hb, None, ch, tq), lambda h, t: (h, 0, 0, t))
    k_spec = pl.BlockSpec((hb, None, ch, t_pad), lambda h, t: (h, 1, 0, 0))
    v_spec = pl.BlockSpec((hb, None, ch, t_pad), lambda h, t: (h, 2, 0, 0))
    o_spec = pl.BlockSpec((hb, ch, tq), lambda h, t: (h, 0, t))

    vmem_limit = int(min(max(_block_bytes(hb, tq) + (8 << 20), 32 << 20),
                         ceiling))

    out = pl.pallas_call(
        functools.partial(_attn_kernel, valid_len=length,
                          compute_dtype=compute_dtype, exp_dtype=exp_dtype),
        out_shape=jax.ShapeDtypeStruct((B, ch, t_pad), dtype),
        grid_spec=pltpu.PrefetchScalarGridSpec(
            num_scalar_prefetch=0,
            grid=grid,
            in_specs=[q_spec, k_spec, v_spec],
            out_specs=o_spec,
        ),
        compiler_params=pltpu.CompilerParams(
            # Head-block axis parallel (megacore shards whole heads; the large
            # K/V block stays resident across q-tiles); q-tile axis arbitrary.
            dimension_semantics=("parallel", "arbitrary"),
            vmem_limit_bytes=vmem_limit),
    )(qkv4, qkv4, qkv4)

    if t_pad != length:
        out = out[:, :, :length]
    return out.reshape(bs, n_heads * ch, length)


def _reference(qkv, n_heads):
    bs, width, length = qkv.shape
    ch = width // (3 * n_heads)
    qkv_h = qkv.reshape(bs * n_heads, 3 * ch, length)
    q, k, v = qkv_h[:, :ch], qkv_h[:, ch:2 * ch], qkv_h[:, 2 * ch:]
    scale = 1.0 / math.sqrt(math.sqrt(ch))
    w = jnp.einsum('bct,bcs->bts', q * scale, k * scale)
    w = jax.nn.softmax(w.astype(jnp.float32), axis=-1).astype(qkv.dtype)
    a = jnp.einsum('bts,bcs->bct', w, v)
    return a.reshape(bs, -1, length)


def _check(bs, n_heads, ch, length, seed):
    width = 3 * n_heads * ch
    key = jax.random.PRNGKey(seed)
    qkv = jax.random.normal(key, (bs, width, length), dtype=jnp.float32)

    out = jax.block_until_ready(shared_qkv_attention_legacy(qkv, n_heads))
    ref = _reference(qkv, n_heads)

    assert out.shape == (bs, n_heads * ch, length)
    # Tolerance accounts for bf16 MXU operands, bf16 exp (v6e/v7x), the approx
    # EUP reciprocal, and deferred softmax normalization, vs the f32 reference.
    err = float(jnp.max(jnp.abs(out - ref)))
    assert jnp.allclose(out, ref, atol=2e-2, rtol=2e-2), err


if __name__ == "__main__":
    # Case 1: small shape (length < 128 exercises padding + broadcast masking).
    _check(bs=2, n_heads=2, ch=16, length=64, seed=0)
    # Case 2: 128-aligned length, multiple head-blocks (no-mask fast path).
    _check(bs=2, n_heads=8, ch=32, length=256, seed=0)
    print("KERNEL_OK")
</pallas_src>

<mosaic_0001>
module attributes {stable_mosaic.version = 11 : i64} {
  func.func @_attn_kernel(%arg0: i32, %arg1: i32, %arg2: memref<2x1x16x128xf32, #tpu.memory_space<vmem>>, %arg3: memref<2x1x16x128xf32, #tpu.memory_space<vmem>>, %arg4: memref<2x1x16x128xf32, #tpu.memory_space<vmem>>, %arg5: memref<2x16x128xf32, #tpu.memory_space<vmem>>) attributes {dimension_semantics = [#tpu.dimension_semantics<parallel>, #tpu.dimension_semantics<arbitrary>], iteration_bounds = array<i64: 2, 1>, scalar_prefetch = 0 : i64, scratch_operands = 0 : i64, tpu.core_type = #tpu.core_type<tc>, window_params = [{transform_indices = @transform_0, window_bounds = array<i64: 2, 1, 16, 128>}, {transform_indices = @transform_1, window_bounds = array<i64: 2, 1, 16, 128>}, {transform_indices = @transform_2, window_bounds = array<i64: 2, 1, 16, 128>}, {transform_indices = @transform_3, window_bounds = array<i64: 2, 16, 128>}]} {
    %c0 = arith.constant 0 : index
    %c0_0 = arith.constant 0 : index
    %c0_1 = arith.constant 0 : index
    %c0_2 = arith.constant 0 : index
    %0 = vector.load %arg2[%c0, %c0_0, %c0_1, %c0_2] : memref<2x1x16x128xf32, #tpu.memory_space<vmem>>, vector<2x1x16x128xf32>
    %1 = vector.shape_cast %0 : vector<2x1x16x128xf32> to vector<2x16x128xf32>
    %cst = arith.constant 2.500000e-01 : f32
    %2 = vector.broadcast %cst : f32 to vector<2x16x128xf32>
    %3 = arith.mulf %1, %2 : vector<2x16x128xf32>
    %4 = arith.truncf %3 : vector<2x16x128xf32> to vector<2x16x128xbf16>
    %c0_3 = arith.constant 0 : index
    %c0_4 = arith.constant 0 : index
    %c0_5 = arith.constant 0 : index
    %c0_6 = arith.constant 0 : index
    %5 = vector.load %arg3[%c0_3, %c0_4, %c0_5, %c0_6] : memref<2x1x16x128xf32, #tpu.memory_space<vmem>>, vector<2x1x16x128xf32>
    %6 = vector.shape_cast %5 : vector<2x1x16x128xf32> to vector<2x16x128xf32>
    %7 = arith.truncf %6 : vector<2x16x128xf32> to vector<2x16x128xbf16>
    %cst_7 = arith.constant dense<0.000000e+00> : vector<2x128x128xf32>
    %8 = tpu.matmul %4, %7, %cst_7 {dimension_numbers = #tpu.dot_dimension_numbers<[1], [1], [2], [2], [0, 0, 0, 2, 1, 2], [0], [0]>} : vector<2x16x128xbf16>, vector<2x16x128xbf16>, vector<2x128x128xf32> -> vector<2x128x128xf32>
    %9 = tpu.iota {dimensions = array<i32: 2>} : vector<1x1x128xi32>
    %c64_i32 = arith.constant 64 : i32
    %10 = vector.broadcast %c64_i32 : i32 to vector<1x1x128xi32>
    %11 = arith.cmpi slt, %9, %10 : vector<1x1x128xi32>
    %cst_8 = arith.constant -1.000000e+30 : f32
    %12 = vector.shape_cast %11 : vector<1x1x128xi1> to vector<1x1x128xi1>
    %13 = vector.broadcast %12 : vector<1x1x128xi1> to vector<2x128x128xi1>
    %14 = vector.broadcast %cst_8 : f32 to vector<2x128x128xf32>
    %15 = arith.select %13, %8, %14 : vector<2x128x128xi1>, vector<2x128x128xf32>
    %cst_9 = arith.constant dense<0xFF800000> : vector<2x128xf32>
    %16 = vector.multi_reduction <maximumf>, %15, %cst_9 [2] : vector<2x128x128xf32> to vector<2x128xf32>
    %17 = vector.shape_cast %16 : vector<2x128xf32> to vector<2x128x1xf32>
    %18 = vector.broadcast %17 : vector<2x128x1xf32> to vector<2x128x128xf32>
    %19 = arith.subf %15, %18 : vector<2x128x128xf32>
    %20 = arith.truncf %19 : vector<2x128x128xf32> to vector<2x128x128xbf16>
    %21 = math.exp %20 : vector<2x128x128xbf16>
    %22 = arith.extf %21 : vector<2x128x128xbf16> to vector<2x128x128xf32>
    %cst_10 = arith.constant dense<0.000000e+00> : vector<2x128xf32>
    %23 = vector.multi_reduction <add>, %22, %cst_10 [2] : vector<2x128x128xf32> to vector<2x128xf32>
    %c0_11 = arith.constant 0 : index
    %c0_12 = arith.constant 0 : index
    %c0_13 = arith.constant 0 : index
    %c0_14 = arith.constant 0 : index
    %24 = vector.load %arg4[%c0_11, %c0_12, %c0_13, %c0_14] : memref<2x1x16x128xf32, #tpu.memory_space<vmem>>, vector<2x1x16x128xf32>
    %25 = vector.shape_cast %24 : vector<2x1x16x128xf32> to vector<2x16x128xf32>
    %26 = arith.truncf %25 : vector<2x16x128xf32> to vector<2x16x128xbf16>
    %cst_15 = arith.constant dense<0.000000e+00> : vector<2x16x128xf32>
    %27 = tpu.matmul %26, %21, %cst_15 {dimension_numbers = #tpu.dot_dimension_numbers<[2], [2], [1], [1], [0, 0, 0, 1, 1, 1], [0], [0]>} : vector<2x16x128xbf16>, vector<2x128x128xbf16>, vector<2x16x128xf32> -> vector<2x16x128xf32>
    %28 = tpu.reciprocal %23 {approx = true} : vector<2x128xf32> -> vector<2x128xf32>
    %29 = vector.shape_cast %28 : vector<2x128xf32> to vector<2x1x128xf32>
    %30 = vector.broadcast %29 : vector<2x1x128xf32> to vector<2x16x128xf32>
    %31 = arith.mulf %27, %30 : vector<2x16x128xf32>
    %c0_16 = arith.constant 0 : index
    %c0_17 = arith.constant 0 : index
    %c0_18 = arith.constant 0 : index
    %32 = vector.load %arg5[%c0_16, %c0_17, %c0_18] : memref<2x16x128xf32, #tpu.memory_space<vmem>>, vector<2x16x128xf32>
    tpu.vector_store %arg5[%c0_16, %c0_17, %c0_18], %31 {strides = array<i32>} : memref<2x16x128xf32, #tpu.memory_space<vmem>>, vector<2x16x128xf32>,
    return
  }
  func.func @transform_0(%arg0: i32, %arg1: i32) -> (i32, i32, i32, i32) {
    %c0_i32 = arith.constant 0 : i32
    %c0_i32_0 = arith.constant 0 : i32
    %c0_i32_1 = arith.constant 0 : i32
    return %arg0, %c0_i32, %c0_i32_0, %arg1 : i32, i32, i32, i32
  }
  func.func @transform_1(%arg0: i32, %arg1: i32) -> (i32, i32, i32, i32) {
    %c1_i32 = arith.constant 1 : i32
    %c0_i32 = arith.constant 0 : i32
    %c0_i32_0 = arith.constant 0 : i32
    %c0_i32_1 = arith.constant 0 : i32
    return %arg0, %c1_i32, %c0_i32, %c0_i32_0 : i32, i32, i32, i32
  }
  func.func @transform_2(%arg0: i32, %arg1: i32) -> (i32, i32, i32, i32) {
    %c2_i32 = arith.constant 2 : i32
    %c0_i32 = arith.constant 0 : i32
    %c0_i32_0 = arith.constant 0 : i32
    %c0_i32_1 = arith.constant 0 : i32
    return %arg0, %c2_i32, %c0_i32, %c0_i32_0 : i32, i32, i32, i32
  }
  func.func @transform_3(%arg0: i32, %arg1: i32) -> (i32, i32, i32) {
    %c0_i32 = arith.constant 0 : i32
    %c0_i32_0 = arith.constant 0 : i32
    return %arg0, %c0_i32, %arg1 : i32, i32, i32
  }
}

</mosaic_0001>

<bundles_post_ra>
// kernel: tpu_custom_call.1
= control target key start
LH: loop header
LB: loop body
LE: loop exit
PB: predicated region body
PF: predicated region fallthrough
CT: control target
= control target key end

     0   :  { %s2522_s0 = inlined_call_operand.hbm [shape: f32[4,3,16,128], index: 0, kind: input, shape index: {}]   ;;  %s2523_s1 = inlined_call_operand.hbm [shape: f32[4,3,16,128], index: 1, kind: input, shape index: {}]   ;;  %s2524_s2 = inlined_call_operand.hbm [shape: f32[4,3,16,128], index: 2, kind: input, shape index: {}]   ;;  %s2525_s3 = inlined_call_operand.hbm [shape: f32[4,16,128], index: 3, kind: output, shape index: {}]  }
   0x1   :  { %2526 = sst [smem:[#allocation21_spill]] %s2522_s0 }
   0x2   :  { %8 = vsyncpa [#allocation3], 0 }
   0x3   :  { %10 = vsyncpa [#allocation3 + $0x1], 0 }
   0x4   :  { %11 = vsyncpa [#allocation6], 0 }
   0x5   :  { %13 = vsyncpa [#allocation6 + $0x1], 0 }
   0x6   :  { %14 = vsyncpa [#allocation4], 0 }
   0x7   :  { %16 = vsyncpa [#allocation4 + $0x1], 0  ;;  %s1960_s12 = smov 0   ;;  %s1962_s13 = smov 0  }
   0x8   :  { %s1964_s14 = smov 0   ;;  %s1966_s15 = smov 0  }
   0x9   :  { %s1968_s16 = smov 0   ;;  %s1970_s17 = smov 0  }
   0xa LB: > { %s1991_s18 = sadd.s32 4294967295, %s1915_s17   ;;  %s1469_s19 = sadd.s32 4294967294, %s1915_s17   ;;  %s1915_s17 = sphi %s1970_s17, %s22_s17   ;;  %s1911_s16 = sphi %s1968_s16, %s2536_s16   ;;  %s1907_s15 = sphi %s1966_s15, %s2535_s15   ;;  %s1903_s14 = sphi %s1964_s14, %s2534_s14   ;;  %s1899_s13 = sphi %s1962_s13, %s2533_s13   ;;  %s1895_s12 = sphi %s1960_s12, %s2532_s12  }
   0xb   : > { %s34_s20 = sadd.s32 1, %s1911_s16  ;;  %s43_s21 = sadd.s32 1, %s1903_s14 }
   0xc   : > { %p36_p0 = scmp.ge.s32.totalorder %s34_s20, 2  ;;  %p50_p1 = scmp.ne.s32.totalorder %s1903_s14, %s1899_s13 }
   0xd   : > { %p51_p2 = scmp.eq.s32.totalorder %s1915_s17, 0  ;;  %p56_p3 = scmp.ne.s32.totalorder %s1899_s13, %s1895_s12 }
   0xe   : > { %s2538_s20 = smov (%p36_p0, %s34_s20), 0  ;;  %p57_p5 = scmp.eq.s32.totalorder %s1991_s18, 0 }
   0xf   : > { %p2003_p4 = por %p51_p2, %p50_p1  ;;  %s38_s23 = ssub.s32 %s1911_s16, %s2538_s20 }
  0x10   : > { %p134_p6 = scmp.eq.s32.totalorder %s1991_s18, 1  ;;  %p41_p7 = scmp.eq.s32.totalorder %s38_s23, 0 }
  0x11   : > { %p2011_p8 = por %p57_p5, %p56_p3  ;;  %p140_p10 = scmp.eq.s32.totalorder %s1469_s19, 1 }
  0x12   : > { %p2015_p9 = por %p134_p6, %p50_p1  ;;  %p1471_p12 = scmp.ge.s32.totalorder %s1915_s17, 2 }
  0x13   : > { %s2020_s26 = scalar_select %p41_p7, %s1903_s14, %s43_s21  }
  0x14   : > { %p2022_p11 = por %p140_p10, %p56_p3  ;;  %156 = sbr.rel (%p1471_p12) target bundleno = 67 (0x43), region = 16 }
  0x1b   : > { %s160_s28 = sand.u32 1, %s1903_s14   ;;  %s2031_s29 = smul.u32 1536, %s1911_s16 }
  0x1c   : > { %s2033_s30 = sshll.u32 %s160_s28, 5  ;;  %s2531_s0 = sld [smem:[#allocation21_spill]] }
  0x1d   : > { %s1628_s7 = scalar_select %p2003_p4, [#allocation0], [#allocation15] }
  0x1e   : > { %s164_s8 = scalar_lea.vmem [#allocation2], %s2033_s30  ;;  %s1917_s11 = smov 768  }
  0x1f   : > { %s185_s9 = sshll.u32 %s164_s8, 4  ;;  %s177_s10 = sld [smem:[%s1628_s7]]   ;;  %s186_s9 = int_to_ptr.vmem [resolvable:$true] %s185_s9 }
  0x20   : > { %1629 = sst [smem:[#allocation10]] (%p2003_p4), %s1917_s11  ;;  %s1918_s19 = smov 256  }
  0x21   : > { %1630 = sst [smem:[#allocation10 + $0x1]] (%p2003_p4), %s1918_s19  ;;  %s1919_s21 = smov 2  }
  0x22   : > { %s172_s6 = scalar_lea.hbm %s2531_s0, %s2031_s29  ;;  %1631 = sst [smem:[#allocation10 + $0x2]] (%p2003_p4), %s1919_s21 }
  0x23   : > { %s1920_s23 = smov 128   ;;  %s1921_s5 = smov 8  }
  0x24   : > { %1632 = sst [smem:[#allocation10 + $0x3]] (%p2003_p4), %s1920_s23  ;;  %s161_s8 = scalar_lea.sflag [#allocation3], %s160_s28 }
  0x25   : > { %1633 = sst [smem:[#allocation10 + $0x4]] (%p2003_p4), %s1920_s23  ;;  %s1476_s4 = sshll.u32 %s177_s10, 26 }
  0x26   : > { %1634 = sst [smem:[#allocation10 + $0x5]] (%p2003_p4), %s1921_s5  ;;  %s1477_s7 = sadd.s32 134217728, %s1476_s4 }
  0x27   : > { %s1922_s0 = smov [#allocation9]  }
  0x28   : > { %1635 = dma.general (%p2003_p4), %s172_s6, 512, %s186_s9, %s161_s8, %s1922_s0, [#allocation10], %s1477_s7, 0  }
  0x29   : > { %s208_s11 = sand.u32 1, %s1915_s17   ;;  %s1378_s10 = scalar_lea.hbm %s2523_s1, %s2031_s29 }
  0x2a   : > { %s1379_s23 = scalar_lea.hbm %s1378_s10, 256  ;;  %s212_s4 = scalar_lea.vmem [#allocation5], %s2033_s30 }
  0x2b   : > { %s1636_s28 = scalar_select %p2003_p4, [#allocation0], [#allocation16] }
  0x2c   : > { %s233_s0 = sshll.u32 %s212_s4, 4  ;;  %s1923_s9 = smov 768   ;;  %s234_s0 = int_to_ptr.vmem [resolvable:$true] %s233_s0 }
  0x2d   : > { %s225_s6 = sld [smem:[%s1636_s28]]   ;;  %s1924_s5 = smov 256  }
  0x2e   : > { %1637 = sst [smem:[#allocation12]] (%p2003_p4), %s1923_s9  ;;  %s1925_s7 = smov 2  }
  0x2f   : > { %1638 = sst [smem:[#allocation12 + $0x1]] (%p2003_p4), %s1924_s5  ;;  %s1926_s8 = smov 128  }
  0x30   : > { %1639 = sst [smem:[#allocation12 + $0x2]] (%p2003_p4), %s1925_s7  ;;  %s1927_s21 = smov 8  }
  0x31   : > { %1640 = sst [smem:[#allocation12 + $0x3]] (%p2003_p4), %s1926_s8  ;;  %s209_s28 = scalar_lea.sflag [#allocation6], %s208_s11 }
  0x32   : > { %1641 = sst [smem:[#allocation12 + $0x4]] (%p2003_p4), %s1926_s8  ;;  %s1928_s4 = smov [#allocation11]  }
  0x33   : > { %s1480_s19 = sshll.u32 %s225_s6, 26  ;;  %1642 = sst [smem:[#allocation12 + $0x5]] (%p2003_p4), %s1927_s21 }
  0x34   : > { %s1481_s10 = sadd.s32 134217728, %s1480_s19 }
  0x35   : > { %1643 = dma.general (%p2003_p4), %s1379_s23, 512, %s234_s0, %s209_s28, %s1928_s4, [#allocation12], %s1481_s10, 0  }
  0x36   : > { %s1385_s6 = scalar_lea.hbm %s2524_s2, %s2031_s29  ;;  %s260_s11 = scalar_lea.vmem [#allocation7], %s2033_s30 }
  0x37   : > { %s1386_s7 = scalar_lea.hbm %s1385_s6, 512  ;;  %s281_s19 = sshll.u32 %s260_s11, 4  ;;  %s282_s19 = int_to_ptr.vmem [resolvable:$true] %s281_s19 }
  0x38   : > { %s1644_s8 = scalar_select %p2003_p4, [#allocation0], [#allocation17] }
  0x39   : > { %s1929_s23 = smov 768   ;;  %s1930_s0 = smov 256  }
  0x3a   : > { %s273_s21 = sld [smem:[%s1644_s8]]   ;;  %s1931_s10 = smov 2  }
  0x3b   : > { %1645 = sst [smem:[#allocation14]] (%p2003_p4), %s1929_s23  ;;  %s1932_s4 = smov 128  }
  0x3c   : > { %1646 = sst [smem:[#allocation14 + $0x1]] (%p2003_p4), %s1930_s0  ;;  %s1933_s30 = smov 8  }
  0x3d   : > { %1647 = sst [smem:[#allocation14 + $0x2]] (%p2003_p4), %s1931_s10  ;;  %s1934_s5 = smov [#allocation13]  }
  0x3e   : > { %1648 = sst [smem:[#allocation14 + $0x3]] (%p2003_p4), %s1932_s4 }
  0x3f   : > { %1649 = sst [smem:[#allocation14 + $0x4]] (%p2003_p4), %s1932_s4 }
  0x40   : > { %s1484_s29 = sshll.u32 %s273_s21, 26  ;;  %1650 = sst [smem:[#allocation14 + $0x5]] (%p2003_p4), %s1933_s30 }
  0x41   : > { %s1485_s9 = sadd.s32 134217728, %s1484_s29 }
  0x42   : > { %1651 = dma.general (%p2003_p4), %s1386_s7, 512, %s282_s19, %s209_s28, %s1934_s5, [#allocation14], %s1485_s9, 0  }
  0x43 PF: > { %p1486_p13 = scmp.ge.s32.totalorder %s1915_s17, 1  ;;  %p302_p0 = scmp.lt.s32.totalorder %s1915_s17, 3 }
  0x45   : > { %p303_p1 = pnand %p1486_p13, %p302_p0 }
  0x46   : > { %s2102_s6 = sand.u32 (!%p303_p1), 1, %s1899_s13  }
  0x47   : > { %306 = sbr.rel (%p303_p1) target bundleno = 929 (0x3a1), region = 32  ;;  %s2105_s8 = sshll.u32 (!%p303_p1), %s2102_s6, 5 }
  0x48   : > { %s309_s11 = scalar_lea.sflag (!%p303_p1), [#allocation3], %s2102_s6  ;;  %s312_s21 = scalar_lea.vmem (!%p303_p1), [#allocation2], %s2105_s8 }
  0x4e   : > { %1882 = dma.done.wait (%p2011_p8), %s309_s11, 512  }
  0x4f   : > { %1884 = vsyncadd (%p2011_p8), %s309_s11, 4294966784  ;;  %s317_s22 = sand.u32 1, %s1991_s18   ;;  %s321_s7 = scalar_lea.vmem [#allocation5], %s2105_s8 }
  0x50   : > { %s318_s28 = scalar_lea.sflag [#allocation6], %s317_s22 }
  0x51   : > { %1886 = dma.done.wait (%p2011_p8), %s318_s28, 1024  }
  0x52   : > { %1888 = vsyncadd (%p2011_p8), %s318_s28, 4294966272  ;;  %v368_v0 = vld [vmem:[%s312_s21] sm:$0xff]  ;;  %v369_v1 = vld [vmem:[%s312_s21 + $0x8] sm:$0xff]  ;;  %vm400_vm0 = vcmask 130048   ;;  %v659_v32 = vlaneseq  ;;  %vm1936_vm2 = vmmov 0   ;;  %s330_s18 = scalar_lea.vmem [#allocation7], %s2105_s8 }
  0x53   : > { %v372_v2 = vmul.f32 0.25, %v368_v0  ;;  %v373_v3 = vmul.f32 0.25, %v369_v1  ;;  %v378_v4 = vld [vmem:[%s321_s7] sm:$0xff]  ;;  %v379_v5 = vld [vmem:[%s321_s7 + $0x8] sm:$0xff]  ;;  %v380_v8 = vld [vmem:[%s321_s7 + $0x10] sm:$0xff]  ;;  %vm1113_vm3 = vcmask 130112  }
  0x54   : > { %v382_v6 = vpack.c.bf16 %v379_v5, %v378_v4  ;;  %v381_v9 = vld [vmem:[%s321_s7 + $0x18] sm:$0xff]  ;;  %v370_v11 = vld [vmem:[%s312_s21 + $0x10] sm:$0xff]  ;;  %v2136_v33 = vand.u32 127, %v659_v32  ;;  %vm1120_vm4 = vcmask 195712   ;;  %vm1127_vm5 = vcmask 261312   ;;  %s362_s24 = scalar_lea.vmem [#allocation8], %s2105_s8 }
  0x55   : > { %v376_v7 = vpack.c.bf16 %v373_v3, %v372_v2  ;;  %v383_v10 = vpack.c.bf16 %v381_v9, %v380_v8  ;;  %v371_v12 = vld [vmem:[%s312_s21 + $0x18] sm:$0xff]  ;;  %v374_v13 = vmul.f32 0.25, %v370_v11  ;;  %vm1134_vm6 = vcmask 326912   ;;  %s1336_s19 = sshll.u32 %s362_s24, 4  ;;  %s1514_s23 = sshll.u32 %s1907_s15, 9  ;;  %s2468_s19 = int_to_ptr.vmem [resolvable:$true] %s1336_s19 }
  0x56   : > { %1551 = vmatprep.subr.bf16.mxu0 %v382_v6  ;;  %v375_v14 = vmul.f32 0.25, %v371_v12  ;;  %vm661_vm1 = vcmp.lt.s32.totalorder %v2136_v33, 64  ;;  %vm1141_vm7 = vcmask 392512   ;;  %vm1148_vm8 = vcmask 458112   ;;  %s2473_s4 = scalar_lea.hbm %s2525_s3, %s1514_s23  ;;  %s1321_s15 = scalar_lea.sflag [#allocation4], %s2102_s6 }
  0x57   : > { %384 = vxpose.xlu0.c.b16.start.end [1/1] (short) %v376_v7, 128  ;;  %1552 = vmatpush3.bf16.msra.mxu0 %v382_v6  ;;  %vm1155_vm9 = vcmask 523712   ;;  %vm1162_vm10 = vcmask 589312   ;;  %vm1169_vm11 = vcmask 654912   ;;  %vm1176_vm12 = vcmask 720512   ;;  %s1829_s29 = scalar_lea.vmem %s2468_s19, 512  ;;  %s1937_s30 = smov [#allocation8]  }
  0x58   : > { %1569 = vmatprep.subr.bf16.mxu1 %v383_v10  ;;  %v377_v15 = vpack.c.bf16 %v375_v14, %v374_v13  ;;  %vm1183_vm13 = vcmask 786112   ;;  %vm1190_vm14 = vcmask 851712   ;;  %vm1197_vm15 = vcmask 917312   ;;  %p1830_p2 = scmp.ne.s32.totalorder %s2468_s19, %s1829_s29  ;;  %s1833_s9 = sshll.u32 %s1937_s30, 4  ;;  %s1834_s9 = int_to_ptr.vmem [resolvable:$false] %s1833_s9 }
  0x59   : > { %1570 = vmatpush3.bf16.msra.mxu1 %v383_v10  ;;  %s1835_s5 = scalar_lea.vmem %s1834_s9, 1024  ;;  %p1836_p5 = scmp.lt.s32.totalorder %s2468_s19, %s1834_s9 }
  0x5a   : > { %p1831_p3 = pnand %p1830_p2, %p2015_p9  ;;  %p1837_p6 = scmp.lt.s32.totalorder %s1835_s5, %s1829_s29 }
  0x5c   : > { %p1832_p4 = pneg %p1831_p3  ;;  %p1838_p7 = por %p1837_p6, %p1836_p5 }
  0x5e   : > { %p1839_p8 = pnand %p1838_p7, %p1832_p4 }
  0x74   : > { %522 = vxpose.xlu0.c.b16.start.end [1/1] (short) %v377_v15, 128 }
  0xbd   : > { %v392_v16 = vpop.trf.xlu0 }
  0xbe   : > { %1553 = vmatprep.mubr.msk.bf16.mxu0 %vm400_vm0, %v392_v16 }
  0xc1   : > { %v393_v17 = vpop.trf.xlu0 }
  0xc2   : > { %1554 = vmatmul.mubr.msk.bf16.vlgmr.msra.gmra.mrb[0].mxu0 %vm400_vm0, %v393_v17 }
  0xc5   : > { %v394_v18 = vpop.trf.xlu0 }
  0xc6   : > { %1557 = vmatprep.mubr.msk.bf16.mxu0 %vm400_vm0, %v394_v18 }
  0xc9   : > { %v395_v19 = vpop.trf.xlu0 }
  0xca   : > { %1558 = vmatmul.mubr.msk.bf16.gmra.mrb[4].mxu0 %vm400_vm0, %v395_v19 }
  0xcd   : > { %v396_v20 = vpop.trf.xlu0 }
  0xce   : > { %1561 = vmatprep.mubr.msk.bf16.mxu0 %vm400_vm0, %v396_v20 }
  0xd1   : > { %v397_v21 = vpop.trf.xlu0 }
  0xd2   : > { %1562 = vmatmul.mubr.msk.bf16.gmra.mrb[8].mxu0 %vm400_vm0, %v397_v21 }
  0xd5   : > { %v398_v22 = vpop.trf.xlu0 }
  0xd6   : > { %1565 = vmatprep.mubr.msk.bf16.mxu0 %vm400_vm0, %v398_v22 }
  0xd9   : > { %v399_v23 = vpop.trf.xlu0 }
  0xda   : > { %1566 = vmatmul.mubr.msk.bf16.gmra.mrb[12].mxu0 %vm400_vm0, %v399_v23 }
  0xdd   : > { %v530_v24 = vpop.trf.xlu0 }
  0xde   : > { %1571 = vmatprep.mubr.msk.bf16.mxu1 %vm400_vm0, %v530_v24 }
  0xe1   : > { %v531_v25 = vpop.trf.xlu0 }
  0xe2   : > { %1572 = vmatmul.mubr.msk.bf16.vlgmr.msra.gmra.mrb[0].mxu1 %vm400_vm0, %v531_v25 }
  0xe5   : > { %v532_v26 = vpop.trf.xlu0 }
  0xe6   : > { %1575 = vmatprep.mubr.msk.bf16.mxu1 %vm400_vm0, %v532_v26 }
  0xe9   : > { %v533_v27 = vpop.trf.xlu0 }
  0xea   : > { %1576 = vmatmul.mubr.msk.bf16.gmra.mrb[4].mxu1 %vm400_vm0, %v533_v27 }
  0xed   : > { %v534_v28 = vpop.trf.xlu0 }
  0xee   : > { %1579 = vmatprep.mubr.msk.bf16.mxu1 %vm400_vm0, %v534_v28 }
  0xf1   : > { %v535_v29 = vpop.trf.xlu0 }
  0xf2   : > { %1580 = vmatmul.mubr.msk.bf16.gmra.mrb[8].mxu1 %vm400_vm0, %v535_v29 }
  0xf5   : > { %v536_v30 = vpop.trf.xlu0 }
  0xf6   : > { %1583 = vmatprep.mubr.msk.bf16.mxu1 %vm400_vm0, %v536_v30 }
  0xf9   : > { %v537_v31 = vpop.trf.xlu0 }
  0xfa   : > { %1584 = vmatmul.mubr.msk.bf16.gmra.mrb[12].mxu1 %vm400_vm0, %v537_v31  ;;  %vm1204_vm0 = vcmask 982912  }
 0x195   : > { %v1555_v34 = vpop.f32.mrb[0].mxu0 }
 0x196   : > { %v459_v35 = vpop.f32.mrb[1].mxu0  ;;  %v2141_v36 = vsel %vm661_vm1, %v1555_v34, -1e+30 }
 0x197   : > { %700 = vmax.xlane.f32.xlu1 %v2141_v36  ;;  %v1556_v37 = vpop.f32.mrb[2].mxu0  ;;  %v2191_v1 = vsel %vm661_vm1, %v459_v35, -1e+30 }
 0x198   : > { %v462_v38 = vpop.f32.mrb[3].mxu0  ;;  %v2217_v11 = vsel %vm661_vm1, %v1556_v37, -1e+30  ;;  %v1935_v37 = vmov 0.0  }
 0x199   : > { %v665_v21 = vsel %vm661_vm1, %v462_v38, -1e+30  ;;  %1587 = vmatprep.subr.bf16.mxu0 %v1935_v37  ;;  %1607 = vmatprep.subr.bf16.mxu1 %v1935_v37 }
 0x19a   : > { %1603 = vmatprep.mubr.msk.bf16.mxu0 %vm1936_vm2, %v1935_v37  ;;  %1623 = vmatprep.mubr.msk.bf16.mxu1 %vm1936_vm2, %v1935_v37 }
 0x19d   : > { %v1559_v39 = vpop.f32.mrb[4].mxu0 }
 0x19e   : > { %v2144_v40 = vpop.f32.mrb[5].mxu0  ;;  %v2148_v41 = vsel %vm661_vm1, %v1559_v39, -1e+30 }
 0x19f   : > { %v1560_v42 = vpop.f32.mrb[6].mxu0  ;;  %v2271_v34 = vsel %vm661_vm1, %v2144_v40, -1e+30 }
 0x1a0   : > { %v478_v43 = vpop.f32.mrb[7].mxu0  ;;  %v2152_v44 = vsel %vm661_vm1, %v1560_v42, -1e+30 }
 0x1a1   : > { %v2156_v45 = vsel %vm661_vm1, %v478_v43, -1e+30 }
 0x1a2   : > { %706 = vmax.xlane.f32.xlu0 %v2156_v45 }
 0x1a5   : > { %v1563_v46 = vpop.f32.mrb[8].mxu0 }
 0x1a6   : > { %v491_v47 = vpop.f32.mrb[9].mxu0  ;;  %v2161_v48 = vsel %vm661_vm1, %v1563_v46, -1e+30 }
 0x1a7   : > { %716 = vmax.xlane.f32.xlu0 %v2161_v48  ;;  %v1564_v49 = vpop.f32.mrb[10].mxu0  ;;  %v2166_v50 = vsel %vm661_vm1, %v491_v47, -1e+30 }
 0x1a8   : > { %v494_v51 = vpop.f32.mrb[11].mxu0  ;;  %v2170_v52 = vsel %vm661_vm1, %v1564_v49, -1e+30 }
 0x1a9   : > { %v2174_v53 = vsel %vm661_vm1, %v494_v51, -1e+30 }
 0x1ad   : > { %v1567_v54 = vpop.f32.mrb[12].mxu0 }
 0x1ae   : > { %v507_v55 = vpop.f32.mrb[13].mxu0  ;;  %v2276_v35 = vsel %vm661_vm1, %v1567_v54, -1e+30 }
 0x1af   : > { %v1568_v56 = vpop.f32.mrb[14].mxu0  ;;  %v2246_v22 = vsel %vm661_vm1, %v507_v55, -1e+30 }
 0x1b0   : > { %v510_v57 = vpop.f32.mrb[15].mxu0  ;;  %v2178_v58 = vsel %vm661_vm1, %v1568_v56, -1e+30 }
 0x1b1   : > { %v2182_v59 = vsel %vm661_vm1, %v510_v57, -1e+30 }
 0x1b5   : > { %v1573_v60 = vpop.f32.mrb[0].mxu1 }
 0x1b6   : > { %v596_v61 = vpop.f32.mrb[1].mxu1  ;;  %v2186_v62 = vsel %vm661_vm1, %v1573_v60, -1e+30 }
 0x1b7   : > { %732 = vmax.xlane.f32.xlu1 %v2186_v62  ;;  %v1574_v63 = vpop.f32.mrb[2].mxu1  ;;  %v2196_v3 = vsel %vm661_vm1, %v596_v61, -1e+30 }
 0x1b8   : > { %v599_v0 = vpop.f32.mrb[3].mxu1  ;;  %v2222_v13 = vsel %vm661_vm1, %v1574_v63, -1e+30 }
 0x1b9   : > { %v681_v25 = vsel %vm661_vm1, %v599_v0, -1e+30 }
 0x1bb   : > { %696 = vmax.xlane.f32.xlu1 %v2191_v1 }
 0x1bd   : > { %v1577_v2 = vpop.f32.mrb[4].mxu1 }
 0x1be   : > { %v612_v4 = vpop.f32.mrb[5].mxu1  ;;  %v2200_v5 = vsel %vm661_vm1, %v1577_v2, -1e+30 }
 0x1bf   : > { %728 = vmax.xlane.f32.xlu1 %v2196_v3  ;;  %v1578_v6 = vpop.f32.mrb[6].mxu1  ;;  %v2205_v7 = vsel %vm661_vm1, %v612_v4, -1e+30 }
 0x1c0   : > { %v615_v8 = vpop.f32.mrb[7].mxu1  ;;  %v2209_v9 = vsel %vm661_vm1, %v1578_v6, -1e+30 }
 0x1c1   : > { %v2213_v10 = vsel %vm661_vm1, %v615_v8, -1e+30 }
 0x1c3   : > { %702 = vmax.xlane.f32.xlu1 %v2217_v11 }
 0x1c5   : > { %v1581_v12 = vpop.f32.mrb[8].mxu1 }
 0x1c6   : > { %v2226_v14 = vsel %vm661_vm1, %v1581_v12, -1e+30  ;;  %v628_v15 = vpop.f32.mrb[9].mxu1 }
 0x1c7   : > { %734 = vmax.xlane.f32.xlu1 %v2222_v13  ;;  %748 = vmax.xlane.f32.xlu0 %v2226_v14  ;;  %v1582_v16 = vpop.f32.mrb[10].mxu1  ;;  %v2232_v17 = vsel %vm661_vm1, %v628_v15, -1e+30 }
 0x1c8   : > { %v631_v18 = vpop.f32.mrb[11].mxu1  ;;  %v2236_v19 = vsel %vm661_vm1, %v1582_v16, -1e+30 }
 0x1c9   : > { %v2240_v20 = vsel %vm661_vm1, %v631_v18, -1e+30 }
 0x1cb   : > { %698 = vmax.xlane.f32.xlu1 %v665_v21  ;;  %720 = vmax.xlane.f32.xlu0 %v2246_v22 }
 0x1cd   : > { %v1585_v23 = vpop.f32.mrb[12].mxu1 }
 0x1ce   : > { %v644_v24 = vpop.f32.mrb[13].mxu1  ;;  %v2253_v26 = vsel %vm661_vm1, %v1585_v23, -1e+30 }
 0x1cf   : > { %730 = vmax.xlane.f32.xlu1 %v681_v25  ;;  %v2257_v27 = vsel %vm661_vm1, %v644_v24, -1e+30  ;;  %v1586_v28 = vpop.f32.mrb[14].mxu1 }
 0x1d0   : > { %752 = vmax.xlane.f32.xlu0 %v2257_v27  ;;  %v647_v29 = vpop.f32.mrb[15].mxu1  ;;  %v2262_v30 = vsel %vm661_vm1, %v1586_v28, -1e+30 }
 0x1d1   : > { %v2266_v31 = vsel %vm661_vm1, %v647_v29, -1e+30  ;;  %vm1211_vm1 = vcmask 1048512  }
 0x1d3   : > { %704 = vmax.xlane.f32.xlu1 %v2271_v34 }
 0x1d4   : > { %724 = vmax.xlane.f32.xlu0 %v2276_v35 }
 0x1d7   : > { %736 = vmax.xlane.f32.xlu1 %v2205_v7 }
 0x1d8   : > { %756 = vmax.xlane.f32.xlu0 %v2253_v26 }
 0x1db   : > { %708 = vmax.xlane.f32.xlu1 %v2148_v41 }
 0x1df   : > { %710 = vmax.xlane.f32.xlu1 %v2152_v44 }
 0x1e3   : > { %740 = vmax.xlane.f32.xlu1 %v2200_v5 }
 0x1e7   : > { %742 = vmax.xlane.f32.xlu1 %v2209_v9 }
 0x1eb   : > { %738 = vmax.xlane.f32.xlu1 %v2213_v10 }
 0x1ef   : > { %712 = vmax.xlane.f32.xlu1 %v2166_v50 }
 0x1f3   : > { %744 = vmax.xlane.f32.xlu1 %v2232_v17 }
 0x1f7   : > { %714 = vmax.xlane.f32.xlu1 %v2174_v53 }
 0x1fb   : > { %746 = vmax.xlane.f32.xlu1 %v2240_v20 }
 0x1ff   : > { %718 = vmax.xlane.f32.xlu1 %v2170_v52 }
 0x203   : > { %750 = vmax.xlane.f32.xlu1 %v2236_v19 }
 0x207   : > { %722 = vmax.xlane.f32.xlu1 %v2182_v59 }
 0x20b   : > { %754 = vmax.xlane.f32.xlu1 %v2266_v31 }
 0x20f   : > { %726 = vmax.xlane.f32.xlu1 %v2178_v58 }
 0x213   : > { %758 = vmax.xlane.f32.xlu1 %v2262_v30 }
 0x224   : > { %v701_v38 = vpop.xlane.xlu1 %700 }
 0x225   : > { %v762_v46 = vsub.f32 %v2141_v36, %v701_v38 }
 0x244   : > { %v733_v39 = vpop.xlane.xlu1 %732 }
 0x245   : > { %v778_v54 = vsub.f32 %v2186_v62, %v733_v39 }
 0x248   : > { %v697_v40 = vpop.xlane.xlu1 %696 }
 0x249   : > { %v760_v61 = vsub.f32 %v2191_v1, %v697_v40 }
 0x24c   : > { %v729_v42 = vpop.xlane.xlu1 %728 }
 0x24d   : > { %v776_v36 = vsub.f32 %v2196_v3, %v729_v42 }
 0x250   : > { %v703_v43 = vpop.xlane.xlu1 %702 }
 0x251   : > { %v763_v47 = vsub.f32 %v2217_v11, %v703_v43 }
 0x253   : > { %v793_v49 = vpack.c.bf16 %v763_v47, %v762_v46 }
 0x254   : > { %v735_v51 = vpop.xlane.xlu1 %734 }
 0x255   : > { %v812_v55 = vmul.bf16 1069105081, %v793_v49  ;;  %v779_v56 = vsub.f32 %v2222_v13, %v735_v51  ;;  %v707_v13 = vpop.xlane.xlu0 %706 }
 0x257   : > { %1733 = vpow.bf16 %v812_v55  ;;  %v801_v57 = vpack.c.bf16 %v779_v56, %v778_v54 }
 0x258   : > { %v699_v60 = vpop.xlane.xlu1 %698 }
 0x259   : > { %v836_v63 = vmul.bf16 1069105081, %v801_v57  ;;  %v761_v0 = vsub.f32 %v665_v21, %v699_v60  ;;  %v765_v21 = vsub.f32 %v2156_v45, %v707_v13 }
 0x25b   : > { %1735 = vpow.bf16 %v836_v63  ;;  %v792_v2 = vpack.c.bf16 %v761_v0, %v760_v61 }
 0x25c   : > { %v731_v4 = vpop.xlane.xlu1 %730 }
 0x25d   : > { %v809_v6 = vmul.bf16 1069105081, %v792_v2  ;;  %v777_v8 = vsub.f32 %v681_v25, %v731_v4 }
 0x25f   : > { %1737 = vpow.bf16 %v809_v6  ;;  %v800_v11 = vpack.c.bf16 %v777_v8, %v776_v36 }
 0x260   : > { %v705_v62 = vpop.xlane.xlu1 %704 }
 0x261   : > { %v833_v12 = vmul.bf16 1069105081, %v800_v11  ;;  %v764_v16 = vsub.f32 %v2271_v34, %v705_v62  ;;  %v717_v11 = vpop.xlane.xlu0 %716 }
 0x262   : > { %v1734_v15 = vpop.eup %1733 }
 0x263   : > { %1739 = vpow.bf16 %v833_v12  ;;  %v858_v18 = vunpack.c.l.bf16 %v1734_v15  ;;  %v794_v24 = vpack.c.bf16 %v765_v21, %v764_v16  ;;  %v859_v28 = vunpack.c.h.bf16 %v1734_v15 }
 0x264   : > { %v737_v1 = vpop.xlane.xlu1 %736 }
 0x265   : > { %892 = vadd.xlane.f32.xlu0 %v858_v18  ;;  %v815_v38 = vmul.bf16 1069105081, %v794_v24  ;;  %v780_v61 = vsub.f32 %v2205_v7, %v737_v1  ;;  %v749_v13 = vpop.xlane.xlu0 %748 }
 0x266   : > { %v1736_v23 = vpop.eup %1735 }
 0x267   : > { %v874_v3 = vunpack.c.l.bf16 %v1736_v23  ;;  %v875_v40 = vunpack.c.h.bf16 %v1736_v23  ;;  %1741 = vpow.bf16 %v815_v38 }
 0x268   : > { %v709_v29 = vpop.xlane.xlu1 %708 }
 0x269   : > { %894 = vadd.xlane.f32.xlu0 %v859_v28  ;;  %924 = vadd.xlane.f32.xlu1 %v874_v3  ;;  %v766_v34 = vsub.f32 %v2148_v41, %v709_v29 }
 0x26a   : > { %v1738_v25 = vpop.eup %1737 }
 0x26b   : > { %1588 = vmatpush3.bf16.xpose.msra.mxu0 %v1738_v25  ;;  %v856_v39 = vunpack.c.l.bf16 %v1738_v25  ;;  %v857_v49 = vunpack.c.h.bf16 %v1738_v25  ;;  %v721_v25 = vpop.xlane.xlu0 %720 }
 0x26c   : > { %v711_v42 = vpop.xlane.xlu1 %710  ;;  %1589 = vmatprep.subr.bf16.mxu0 %v1935_v37 }
 0x26d   : > { %v767_v45 = vsub.f32 %v2152_v44, %v711_v42  ;;  %888 = vadd.xlane.f32.xlu0 %v856_v39  ;;  %926 = vadd.xlane.f32.xlu1 %v875_v40  ;;  %v770_v39 = vsub.f32 %v2161_v48, %v717_v11 }
 0x26e   : > { %v1740_v43 = vpop.eup %1739 }
 0x26f   : > { %v795_v46 = vpack.c.bf16 %v767_v45, %v766_v34  ;;  %1608 = vmatpush3.bf16.xpose.msra.mxu1 %v1740_v43  ;;  %v872_v47 = vunpack.c.l.bf16 %v1740_v43  ;;  %v873_v55 = vunpack.c.h.bf16 %v1740_v43  ;;  %v786_v45 = vsub.f32 %v2226_v14, %v749_v13 }
 0x270   : > { %v741_v51 = vpop.xlane.xlu1 %740  ;;  %1609 = vmatprep.subr.bf16.mxu1 %v1935_v37 }
 0x271   : > { %v818_v54 = vmul.bf16 1069105081, %v795_v46  ;;  %920 = vadd.xlane.f32.xlu0 %v872_v47  ;;  %890 = vadd.xlane.f32.xlu1 %v857_v49  ;;  %v782_v44 = vsub.f32 %v2200_v5, %v741_v51  ;;  %v753_v47 = vpop.xlane.xlu0 %752 }
 0x272   : > { %v1742_v2 = vpop.eup %1741 }
 0x273   : > { %1743 = vpow.bf16 %v818_v54  ;;  %1590 = vmatpush3.bf16.xpose.msra.mxu0 %v1734_v15  ;;  %v860_v1 = vunpack.c.l.bf16 %v1742_v2 }
 0x274   : > { %v743_v41 = vpop.xlane.xlu1 %742  ;;  %1591 = vmatprep.subr.bf16.mxu0 %v1935_v37 }
 0x275   : > { %v783_v56 = vsub.f32 %v2209_v9, %v743_v41  ;;  %922 = vadd.xlane.f32.xlu1 %v873_v55 }
 0x277   : > { %v803_v57 = vpack.c.bf16 %v783_v56, %v782_v44  ;;  %1610 = vmatpush3.bf16.xpose.msra.mxu1 %v1736_v23  ;;  %v788_v56 = vsub.f32 %v2257_v27, %v753_v47 }
 0x278   : > { %v739_v60 = vpop.xlane.xlu1 %738  ;;  %1611 = vmatprep.subr.bf16.mxu1 %v1935_v37 }
 0x279   : > { %v842_v63 = vmul.bf16 1069105081, %v803_v57  ;;  %v781_v0 = vsub.f32 %v2213_v10, %v739_v60 }
 0x27b   : > { %1745 = vpow.bf16 %v842_v63  ;;  %v802_v4 = vpack.c.bf16 %v781_v0, %v780_v61  ;;  %1592 = vmatpush3.bf16.xpose.msra.mxu0 %v1742_v2 }
 0x27c   : > { %v713_v36 = vpop.xlane.xlu1 %712  ;;  %1593 = vmatprep.subr.bf16.mxu0 %v1935_v37 }
 0x27d   : > { %v839_v5 = vmul.bf16 1069105081, %v802_v4  ;;  %v768_v10 = vsub.f32 %v2166_v50, %v713_v36 }
 0x27e   : > { %v1744_v9 = vpop.eup %1743 }
 0x27f   : > { %1747 = vpow.bf16 %v839_v5  ;;  %v862_v6 = vunpack.c.l.bf16 %v1744_v9  ;;  %v863_v62 = vunpack.c.h.bf16 %v1744_v9 }
 0x280   : > { %v745_v8 = vpop.xlane.xlu1 %744 }
 0x281   : > { %900 = vadd.xlane.f32.xlu0 %v862_v6  ;;  %v784_v23 = vsub.f32 %v2232_v17, %v745_v8 }
 0x283   : > { %1594 = vmatpush3.bf16.xpose.msra.mxu0 %v1744_v9 }
 0x284   : > { %v715_v7 = vpop.xlane.xlu1 %714  ;;  %1595 = vmatprep.subr.bf16.mxu0 %v1935_v37 }
 0x285   : > { %v769_v12 = vsub.f32 %v2174_v53, %v715_v7  ;;  %902 = vadd.xlane.f32.xlu0 %v863_v62  ;;  %v861_v53 = vunpack.c.h.bf16 %v1742_v2 }
 0x286   : > { %v1746_v15 = vpop.eup %1745 }
 0x287   : > { %v796_v16 = vpack.c.bf16 %v769_v12, %v768_v10  ;;  %v878_v18 = vunpack.c.l.bf16 %v1746_v15  ;;  %v879_v50 = vunpack.c.h.bf16 %v1746_v15 }
 0x288   : > { %v747_v21 = vpop.xlane.xlu1 %746 }
 0x289   : > { %v821_v24 = vmul.bf16 1069105081, %v796_v16  ;;  %v785_v28 = vsub.f32 %v2240_v20, %v747_v21  ;;  %932 = vadd.xlane.f32.xlu1 %v878_v18  ;;  %896 = vadd.xlane.f32.xlu0 %v860_v1  ;;  %v952_v21 = vld [vmem:[%s330_s18] sm:$0xff] }
 0x28a   : > { %v1748_v3 = vpop.eup %1747 }
 0x28b   : > { %1749 = vpow.bf16 %v821_v24  ;;  %v804_v29 = vpack.c.bf16 %v785_v28, %v784_v23  ;;  %1612 = vmatpush3.bf16.xpose.msra.mxu1 %v1748_v3  ;;  %v876_v42 = vunpack.c.l.bf16 %v1748_v3  ;;  %v877_v48 = vunpack.c.h.bf16 %v1748_v3  ;;  %v953_v23 = vld [vmem:[%s330_s18 + $0x8] sm:$0xff] }
 0x28c   : > { %v719_v38 = vpop.xlane.xlu1 %718  ;;  %1613 = vmatprep.subr.bf16.mxu1 %v1935_v37  ;;  %v956_v28 = vpack.c.bf16 %v953_v23, %v952_v21 }
 0x28d   : > { %v845_v40 = vmul.bf16 1069105081, %v804_v29  ;;  %v771_v17 = vsub.f32 %v2170_v52, %v719_v38  ;;  %934 = vadd.xlane.f32.xlu1 %v879_v50  ;;  %898 = vadd.xlane.f32.xlu0 %v861_v53  ;;  %v772_v52 = vsub.f32 %v2246_v22, %v721_v25  ;;  %v954_v50 = vld [vmem:[%s330_s18 + $0x10] sm:$0xff]  ;;  %v955_v53 = vld [vmem:[%s330_s18 + $0x18] sm:$0xff] }
 0x28f   : > { %1751 = vpow.bf16 %v845_v40  ;;  %v797_v20 = vpack.c.bf16 %v771_v17, %v770_v39 }
 0x290   : > { %v751_v34 = vpop.xlane.xlu1 %750 }
 0x291   : > { %v824_v43 = vmul.bf16 1069105081, %v797_v20  ;;  %v787_v46 = vsub.f32 %v2236_v19, %v751_v34  ;;  %928 = vadd.xlane.f32.xlu1 %v876_v42  ;;  %v725_v19 = vpop.xlane.xlu0 %724 }
 0x293   : > { %1753 = vpow.bf16 %v824_v43  ;;  %v805_v49 = vpack.c.bf16 %v787_v46, %v786_v45  ;;  %1614 = vmatpush3.bf16.xpose.msra.mxu1 %v1746_v15 }
 0x294   : > { %v723_v51 = vpop.xlane.xlu1 %722  ;;  %1615 = vmatprep.subr.bf16.mxu1 %v1935_v37 }
 0x295   : > { %v848_v54 = vmul.bf16 1069105081, %v805_v49  ;;  %v773_v55 = vsub.f32 %v2182_v59, %v723_v51  ;;  %930 = vadd.xlane.f32.xlu1 %v877_v48  ;;  %v774_v59 = vsub.f32 %v2276_v35, %v725_v19  ;;  %v757_v36 = vpop.xlane.xlu0 %756 }
 0x296   : > { %v1750_v41 = vpop.eup %1749 }
 0x297   : > { %1755 = vpow.bf16 %v848_v54  ;;  %v798_v14 = vpack.c.bf16 %v773_v55, %v772_v52  ;;  %1596 = vmatpush3.bf16.xpose.msra.mxu0 %v1750_v41  ;;  %v864_v12 = vunpack.c.l.bf16 %v1750_v41  ;;  %v865_v15 = vunpack.c.h.bf16 %v1750_v41 }
 0x298   : > { %v755_v44 = vpop.xlane.xlu1 %754  ;;  %1597 = vmatprep.subr.bf16.mxu0 %v1935_v37 }
 0x299   : > { %v827_v57 = vmul.bf16 1069105081, %v798_v14  ;;  %v789_v60 = vsub.f32 %v2266_v31, %v755_v44  ;;  %v790_v31 = vsub.f32 %v2253_v26, %v757_v36  ;;  %v1115_v36 = vadd.s32 4294967280, %v2136_v33 }
 0x29a   : > { %v1752_v61 = vpop.eup %1751 }
 0x29b   : > { %1757 = vpow.bf16 %v827_v57  ;;  %v806_v22 = vpack.c.bf16 %v789_v60, %v788_v56  ;;  %1616 = vmatpush3.bf16.xpose.msra.mxu1 %v1752_v61  ;;  %v880_v13 = vunpack.c.l.bf16 %v1752_v61  ;;  %v881_v18 = vunpack.c.h.bf16 %v1752_v61 }
 0x29c   : > { %v727_v63 = vpop.xlane.xlu1 %726  ;;  %1617 = vmatprep.subr.bf16.mxu1 %v1935_v37 }
 0x29d   : > { %v851_v0 = vmul.bf16 1069105081, %v806_v22  ;;  %v775_v2 = vsub.f32 %v2178_v58, %v727_v63 }
 0x29e   : > { %v1754_v4 = vpop.eup %1753 }
 0x29f   : > { %1759 = vpow.bf16 %v851_v0  ;;  %v799_v5 = vpack.c.bf16 %v775_v2, %v774_v59  ;;  %1598 = vmatpush3.bf16.xpose.msra.mxu0 %v1754_v4  ;;  %v866_v27 = vunpack.c.l.bf16 %v1754_v4  ;;  %v867_v58 = vunpack.c.h.bf16 %v1754_v4 }
 0x2a0   : > { %v759_v9 = vpop.xlane.xlu1 %758  ;;  %1599 = vmatprep.subr.bf16.mxu0 %v1935_v37  ;;  %v1108_v59 = vadd.s32 4294967288, %v2136_v33  ;;  %v2359_v2 = vshrl.u32 %v659_v32, 7  ;;  %v1143_v32 = vadd.s32 4294967248, %v2136_v33 }
 0x2a1   : > { %v830_v6 = vmul.bf16 1069105081, %v799_v5  ;;  %v791_v8 = vsub.f32 %v2262_v30, %v759_v9  ;;  %908 = vadd.xlane.f32.xlu0 %v866_v27  ;;  %v1122_v9 = vadd.s32 4294967272, %v2136_v33 }
 0x2a2   : > { %v1756_v11 = vpop.eup %1755  ;;  %v1111_v5 = vsub.s32 %v1108_v59, %v2359_v2 }
 0x2a3   : > { %1761 = vpow.bf16 %v830_v6  ;;  %v807_v35 = vpack.c.bf16 %v791_v8, %v790_v31  ;;  %1618 = vmatpush3.bf16.xpose.msra.mxu1 %v1756_v11  ;;  %v882_v62 = vunpack.c.l.bf16 %v1756_v11  ;;  %v883_v26 = vunpack.c.h.bf16 %v1756_v11 }
 0x2a4   : > { %1619 = vmatprep.subr.bf16.mxu1 %v1935_v37  ;;  %v1106_v6 = vsub.s32 %v2136_v33, %v2359_v2 }
 0x2a5   : > { %v854_v7 = vmul.bf16 1069105081, %v807_v35  ;;  %910 = vadd.xlane.f32.xlu0 %v867_v58  ;;  %940 = vadd.xlane.f32.xlu1 %v882_v62  ;;  %v1150_v35 = vadd.s32 4294967240, %v2136_v33  ;;  %v1129_v58 = vadd.s32 4294967264, %v2136_v33 }
 0x2a6   : > { %v1758_v10 = vpop.eup %1757 }
 0x2a7   : > { %1763 = vpow.bf16 %v854_v7  ;;  %1600 = vmatpush3.bf16.xpose.msra.mxu0 %v1758_v10  ;;  %v868_v3 = vunpack.c.l.bf16 %v1758_v10  ;;  %v869_v25 = vunpack.c.h.bf16 %v1758_v10  ;;  %v1118_v7 = vsub.s32 %v1115_v36, %v2359_v2 }
 0x2a8   : > { %1601 = vmatprep.subr.bf16.mxu0 %v1935_v37  ;;  %v2382_v21 = vsub.s32 %v1150_v35, %v2359_v2  ;;  %v2385_v23 = vsub.s32 %v1129_v58, %v2359_v2 }
 0x2a9   : > { %904 = vadd.xlane.f32.xlu0 %v864_v12  ;;  %942 = vadd.xlane.f32.xlu1 %v883_v26  ;;  %v1136_v12 = vadd.s32 4294967256, %v2136_v33 }
 0x2aa   : > { %v1760_v30 = vpop.eup %1759 }
 0x2ab   : > { %1620 = vmatpush3.bf16.xpose.msra.mxu1 %v1760_v30  ;;  %v884_v38 = vunpack.c.l.bf16 %v1760_v30  ;;  %v885_v40 = vunpack.c.h.bf16 %v1760_v30 }
 0x2ac   : > { %1621 = vmatprep.subr.bf16.mxu1 %v1935_v37  ;;  %v957_v37 = vpack.c.bf16 %v955_v53, %v954_v50 }
 0x2ad   : > { %906 = vadd.xlane.f32.xlu0 %v865_v15  ;;  %936 = vadd.xlane.f32.xlu1 %v880_v13  ;;  %v2376_v15 = vsub.s32 %v1122_v9, %v2359_v2  ;;  %v1178_v9 = vadd.s32 4294967208, %v2136_v33 }
 0x2ae   : > { %v1762_v16 = vpop.eup %1761 }
 0x2af   : > { %1602 = vmatpush3.bf16.xpose.msra.mxu0 %v1762_v16  ;;  %v870_v1 = vunpack.c.l.bf16 %v1762_v16  ;;  %v871_v39 = vunpack.c.h.bf16 %v1762_v16 }
 0x2b1   : > { %938 = vadd.xlane.f32.xlu1 %v881_v18  ;;  %916 = vadd.xlane.f32.xlu0 %v870_v1  ;;  %v2379_v18 = vsub.s32 %v1143_v32, %v2359_v2  ;;  %v1185_v32 = vadd.s32 4294967200, %v2136_v33 }
 0x2b2   : > { %v1764_v24 = vpop.eup %1763 }
 0x2b3   : > { %1622 = vmatpush3.bf16.xpose.msra.mxu1 %v1764_v24  ;;  %v886_v29 = vunpack.c.l.bf16 %v1764_v24  ;;  %v887_v17 = vunpack.c.h.bf16 %v1764_v24 }
 0x2b5   : > { %912 = vadd.xlane.f32.xlu0 %v868_v3  ;;  %948 = vadd.xlane.f32.xlu1 %v886_v29  ;;  %v2390_v29 = vsub.s32 %v1136_v12, %v2359_v2 }
 0x2b6   : > { %1604 = vmatmul.mubr.bf16.vlgmr.msra.gmra.mrb[16].mxu0 %v956_v28 }
 0x2b9   : > { %914 = vadd.xlane.f32.xlu0 %v869_v25  ;;  %944 = vadd.xlane.f32.xlu1 %v884_v38  ;;  %v1171_v25 = vadd.s32 4294967216, %v2136_v33 }
 0x2ba   : > { %1624 = vmatmul.mubr.bf16.vlgmr.msra.gmra.mrb[16].mxu1 %v957_v37 }
 0x2bd   : > { %918 = vadd.xlane.f32.xlu0 %v871_v39  ;;  %946 = vadd.xlane.f32.xlu1 %v885_v40  ;;  %v1157_v40 = vadd.s32 4294967232, %v2136_v33 }
 0x2c1   : > { %950 = vadd.xlane.f32.xlu1 %v887_v17  ;;  %v1164_v17 = vadd.s32 4294967224, %v2136_v33 }
 0x2f2   : > { %v893_v20 = vpop.xlane.xlu0 %892 }
 0x2f6   : > { %v925_v42 = vpop.xlane.xlu1 %924  ;;  %v895_v34 = vpop.xlane.xlu0 %894 }
 0x2fa   : > { %v927_v45 = vpop.xlane.xlu1 %926  ;;  %v889_v43 = vpop.xlane.xlu0 %888 }
 0x2fe   : > { %v891_v46 = vpop.xlane.xlu1 %890  ;;  %v921_v47 = vpop.xlane.xlu0 %920 }
 0x2ff   : > { %1765 = vrcp.f32 %v891_v46 }
 0x300   : > { %1767 = vrcp.f32 %v893_v20 }
 0x301   : > { %1769 = vrcp.f32 %v889_v43 }
 0x302   : > { %v923_v49 = vpop.xlane.xlu1 %922  ;;  %1771 = vrcp.f32 %v925_v42 }
 0x303   : > { %1773 = vrcp.f32 %v923_v49 }
 0x304   : > { %1775 = vrcp.f32 %v895_v34 }
 0x305   : > { %1777 = vrcp.f32 %v921_v47 }
 0x309   : > { %v1766_v27 = vpop.eup %1765 }
 0x30a   : > { %v1768_v31 = vpop.eup %1767  ;;  %v1112_v10 = vrot.slane %v1766_v27, %v1111_v5 }
 0x30b   : > { %v1770_v11 = vpop.eup %1769  ;;  %v1119_v37 = vrot.slane %v1768_v31, %v1118_v7 }
 0x30c   : > { %v1772_v62 = vpop.eup %1771  ;;  %v1107_v16 = vrot.slane %v1770_v11, %v1106_v6  ;;  %v1192_v11 = vadd.s32 4294967192, %v2136_v33 }
 0x30d   : > { %v1774_v30 = vpop.eup %1773 }
 0x30e   : > { %v901_v48 = vpop.xlane.xlu0 %900  ;;  %v1776_v13 = vpop.eup %1775  ;;  %v1114_v28 = vsel %vm1113_vm3, %v1112_v10, %v1107_v16  ;;  %v1220_v3 = vrot.slane %v1774_v30, %v1111_v5  ;;  %v1181_v16 = vsub.s32 %v1178_v9, %v2359_v2 }
 0x30f   : > { %v1778_v1 = vpop.eup %1777  ;;  %v1121_v34 = vsel %vm1120_vm4, %v1119_v37, %v1114_v28  ;;  %v1126_v46 = vrot.slane %v1776_v13, %v2376_v15  ;;  %v1195_v28 = vsub.s32 %v1192_v11, %v2359_v2 }
 0x310   : > { %v1216_v39 = vrot.slane %v1778_v1, %v1106_v6 }
 0x312   : > { %v903_v52 = vpop.xlane.xlu0 %902  ;;  %v1221_v47 = vsel %vm1113_vm3, %v1220_v3, %v1216_v39  ;;  %v1206_v3 = vadd.s32 4294967176, %v2136_v33 }
 0x316   : > { %v933_v51 = vpop.xlane.xlu1 %932  ;;  %v897_v55 = vpop.xlane.xlu0 %896 }
 0x317   : > { %1779 = vrcp.f32 %v897_v55  ;;  %v1128_v55 = vsel %vm1127_vm5, %v1126_v46, %v1121_v34 }
 0x31a   : > { %v2345_v54 = vpop.xlane.xlu1 %934  ;;  %v899_v14 = vpop.xlane.xlu0 %898 }
 0x31b   : > { %1781 = vrcp.f32 %v899_v14  ;;  %v2412_v14 = vsub.s32 %v1164_v17, %v2359_v2  ;;  %v1199_v17 = vadd.s32 4294967184, %v2136_v33 }
 0x31c   : > { %1783 = vrcp.f32 %v927_v45 }
 0x31d   : > { %1785 = vrcp.f32 %v901_v48 }
 0x31e   : > { %v929_v41 = vpop.xlane.xlu1 %928 }
 0x31f   : > { %1787 = vrcp.f32 %v929_v41  ;;  %v2409_v41 = vsub.s32 %v1157_v40, %v2359_v2 }
 0x321   : > { %v1780_v24 = vpop.eup %1779 }
 0x322   : > { %v931_v19 = vpop.xlane.xlu1 %930  ;;  %v1133_v45 = vrot.slane %v1780_v24, %v2385_v23  ;;  %v1188_v24 = vsub.s32 %v1185_v32, %v2359_v2 }
 0x323   : > { %1789 = vrcp.f32 %v931_v19 }
 0x324   : > { %1791 = vrcp.f32 %v903_v52  ;;  %v2404_v52 = vsub.s32 %v1171_v25, %v2359_v2 }
 0x325   : > { %1793 = vrcp.f32 %v933_v51  ;;  %v1782_v53 = vpop.eup %1781  ;;  %v1225_v51 = vrot.slane %v1772_v62, %v1118_v7 }
 0x326   : > { %v1784_v38 = vpop.eup %1783  ;;  %v1140_v49 = vrot.slane %v1782_v53, %v2390_v29 }
 0x327   : > { %v1786_v42 = vpop.eup %1785 }
 0x328   : > { %v1147_v27 = vrot.slane %v1786_v42, %v2379_v18 }
 0x329   : > { %v1788_v43 = vpop.eup %1787 }
 0x32d   : > { %v1790_v48 = vpop.eup %1789 }
 0x32e   : > { %v2347_v44 = vpop.xlane.xlu0 %908 }
 0x332   : > { %v2349_v56 = vpop.xlane.xlu1 %940  ;;  %v2351_v57 = vpop.xlane.xlu0 %910 }
 0x336   : > { %v2353_v60 = vpop.xlane.xlu1 %942  ;;  %v905_v61 = vpop.xlane.xlu0 %904 }
 0x337   : > { %1795 = vrcp.f32 %v905_v61  ;;  %v1135_v61 = vsel %vm1134_vm6, %v1133_v45, %v1128_v55 }
 0x338   : > { %v1142_v59 = vsel %vm1141_vm7, %v1140_v49, %v1135_v61  ;;  %v1209_v49 = vsub.s32 %v1206_v3, %v2359_v2 }
 0x339   : > { %v1149_v58 = vsel %vm1148_vm8, %v1147_v27, %v1142_v59 }
 0x33a   : > { %v2355_v22 = vpop.xlane.xlu1 %936  ;;  %v907_v63 = vpop.xlane.xlu0 %906 }
 0x33b   : > { %1797 = vrcp.f32 %v907_v63  ;;  %v1230_v63 = vrot.slane %v1784_v38, %v2376_v15 }
 0x33c   : > { %1799 = vrcp.f32 %v2345_v54  ;;  %v1792_v54 = vpop.eup %1791 }
 0x33d   : > { %1801 = vrcp.f32 %v2347_v44  ;;  %v1794_v44 = vpop.eup %1793  ;;  %v1154_v10 = vrot.slane %v1792_v54, %v2382_v21  ;;  %v1202_v54 = vsub.s32 %v1199_v17, %v2359_v2 }
 0x33e   : > { %v939_v0 = vpop.xlane.xlu1 %938  ;;  %v2361_v4 = vpop.xlane.xlu0 %916  ;;  %1803 = vrcp.f32 %v2355_v22  ;;  %v1235_v22 = vrot.slane %v1788_v43, %v2385_v23  ;;  %v1245_v13 = vrot.slane %v1794_v44, %v2379_v18 }
 0x33f   : > { %1805 = vrcp.f32 %v939_v0  ;;  %v1240_v0 = vrot.slane %v1790_v48, %v2390_v29  ;;  %v1156_v23 = vsel %vm1155_vm9, %v1154_v10, %v1149_v58 }
 0x340   : > { %1807 = vrcp.f32 %v2349_v56  ;;  %v1226_v56 = vsel %vm1120_vm4, %v1225_v51, %v1221_v47 }
 0x341   : > { %1809 = vrcp.f32 %v2351_v57  ;;  %v1796_v57 = vpop.eup %1795  ;;  %v1231_v6 = vsel %vm1127_vm5, %v1230_v63, %v1226_v56 }
 0x342   : > { %v2369_v8 = vpop.xlane.xlu1 %948  ;;  %v913_v26 = vpop.xlane.xlu0 %912  ;;  %v1161_v62 = vrot.slane %v1796_v57, %v2409_v41 }
 0x343   : > { %1811 = vrcp.f32 %v913_v26 }
 0x345   : > { %v1798_v5 = vpop.eup %1797 }
 0x346   : > { %v945_v50 = vpop.xlane.xlu1 %944  ;;  %v915_v20 = vpop.xlane.xlu0 %914  ;;  %v1168_v26 = vrot.slane %v1798_v5, %v2412_v14 }
 0x347   : > { %1813 = vrcp.f32 %v915_v20  ;;  %v1800_v31 = vpop.eup %1799 }
 0x348   : > { %1815 = vrcp.f32 %v2353_v60  ;;  %v1802_v35 = vpop.eup %1801  ;;  %v1236_v60 = vsel %vm1134_vm6, %v1235_v22, %v1231_v6  ;;  %v1250_v37 = vrot.slane %v1800_v31, %v2382_v21 }
 0x349   : > { %1817 = vrcp.f32 %v945_v50  ;;  %v1804_v7 = vpop.eup %1803  ;;  %v1241_v12 = vsel %vm1141_vm7, %v1240_v0, %v1236_v60  ;;  %v1163_v50 = vsel %vm1162_vm10, %v1161_v62, %v1156_v23  ;;  %v1175_v40 = vrot.slane %v1802_v35, %v2404_v52 }
 0x34a   : > { %v947_v19 = vpop.xlane.xlu1 %946  ;;  %v919_v36 = vpop.xlane.xlu0 %918  ;;  %v1255_v18 = vrot.slane %v1804_v7, %v2409_v41  ;;  %v1170_v38 = vsel %vm1169_vm11, %v1168_v26, %v1163_v50 }
 0x34b   : > { %1819 = vrcp.f32 %v947_v19  ;;  %v1806_v15 = vpop.eup %1805  ;;  %v1177_v21 = vsel %vm1176_vm12, %v1175_v40, %v1170_v38 }
 0x34c   : > { %1821 = vrcp.f32 %v919_v36  ;;  %v1808_v1 = vpop.eup %1807  ;;  %v1260_v25 = vrot.slane %v1806_v15, %v2412_v14 }
 0x34d   : > { %1823 = vrcp.f32 %v2361_v4  ;;  %v1810_v29 = vpop.eup %1809  ;;  %v1246_v4 = vsel %vm1148_vm8, %v1245_v13, %v1241_v12  ;;  %v1265_v33 = vrot.slane %v1808_v1, %v2404_v52 }
 0x34e   : > { %v951_v30 = vpop.xlane.xlu1 %950  ;;  %v1812_v53 = vpop.eup %1811  ;;  %v1251_v42 = vsel %vm1155_vm9, %v1250_v37, %v1246_v4 }
 0x34f   : > { %1825 = vrcp.f32 %v951_v30  ;;  %v1256_v45 = vsel %vm1162_vm10, %v1255_v18, %v1251_v42  ;;  %v1189_v43 = vrot.slane %v1812_v53, %v1188_v24 }
 0x350   : > { %1827 = vrcp.f32 %v2369_v8  ;;  %v1182_v8 = vrot.slane %v1810_v29, %v1181_v16  ;;  %v1261_v48 = vsel %vm1169_vm11, %v1260_v25, %v1256_v45 }
 0x351   : > { %v1814_v39 = vpop.eup %1813  ;;  %v1266_v44 = vsel %vm1176_vm12, %v1265_v33, %v1261_v48 }
 0x352   : > { %v1816_v20 = vpop.eup %1815  ;;  %v1196_v47 = vrot.slane %v1814_v39, %v1195_v28  ;;  %v1184_v41 = vsel %vm1183_vm13, %v1182_v8, %v1177_v21 }
 0x353   : > { %v1818_v34 = vpop.eup %1817  ;;  %v1191_v19 = vsel %vm1190_vm14, %v1189_v43, %v1184_v41  ;;  %v1270_v56 = vrot.slane %v1816_v20, %v1181_v16 }
 0x354   : > { %v1275_v14 = vrot.slane %v1818_v34, %v1188_v24  ;;  %v1198_v61 = vsel %vm1197_vm15, %v1196_v47, %v1191_v19 }
 0x355   : > { %v1820_v46 = vpop.eup %1819  ;;  %v1271_v2 = vsel %vm1183_vm13, %v1270_v56, %v1266_v44 }
 0x356   : > { %v1822_v51 = vpop.eup %1821  ;;  %v1280_v57 = vrot.slane %v1820_v46, %v1195_v28  ;;  %v1276_v36 = vsel %vm1190_vm14, %v1275_v14, %v1271_v2 }
 0x357   : > { %v1824_v55 = vpop.eup %1823  ;;  %v1210_v22 = vrot.slane %v1822_v51, %v1209_v49 }
 0x358   : > { %v1203_v52 = vrot.slane %v1824_v55, %v1202_v54  ;;  %v1281_v9 = vsel %vm1197_vm15, %v1280_v57, %v1276_v36 }
 0x359   : > { %v1826_v63 = vpop.eup %1825 }
 0x35a   : > { %v1828_v59 = vpop.eup %1827  ;;  %v1205_v0 = vsel %vm1204_vm0, %v1203_v52, %v1198_v61  ;;  %v1290_v31 = vrot.slane %v1826_v63, %v1209_v49 }
 0x35b   : > { %v1212_v27 = vsel %vm1211_vm1, %v1210_v22, %v1205_v0  ;;  %v1285_v11 = vrot.slane %v1828_v59, %v1202_v54 }
 0x35d   : > { %v1286_v62 = vsel %vm1204_vm0, %v1285_v11, %v1281_v9 }
 0x35e   : > { %v1291_v10 = vsel %vm1211_vm1, %v1290_v31, %v1286_v62 }
 0x389   : > { %v992_v5 = vpop.f32.mrb[16].mxu0 }
 0x38a   : > { %v1312_v6 = vmul.f32 %v1212_v27, %v992_v5  ;;  %v1605_v32 = vpop.f32.mrb[17].mxu0 }
 0x38b   : > { %v995_v35 = vpop.f32.mrb[18].mxu0 }
 0x38c   : > { %1316 = vst [vmem:[%s362_s24] sm:$0xff] %v1312_v6  ;;  %v1313_v58 = vmul.f32 %v1212_v27, %v995_v35  ;;  %v1606_v60 = vpop.f32.mrb[19].mxu0 }
 0x38d   : > { %v1033_v7 = vpop.f32.mrb[16].mxu1 }
 0x38e   : > { %1317 = vst [vmem:[%s362_s24 + $0x8] sm:$0xff] %v1313_v58  ;;  %v1314_v12 = vmul.f32 %v1291_v10, %v1033_v7  ;;  %v1625_v26 = vpop.f32.mrb[17].mxu1 }
 0x38f   : > { %v1036_v30 = vpop.f32.mrb[18].mxu1 }
 0x390   : > { %1318 = vst [vmem:[%s362_s24 + $0x10] sm:$0xff] %v1314_v12  ;;  %v1315_v15 = vmul.f32 %v1291_v10, %v1036_v30  ;;  %v1626_v13 = vpop.f32.mrb[19].mxu1 }
 0x392   : > { %1319 = vst [vmem:[%s362_s24 + $0x18] sm:$0xff] %v1315_v15 }
 0x393   : > { %1842 = shalt.err (!%p1839_p8)
}
 0x394   : > { %s1843_s8 = scalar_lea.hbm %s2473_s4, 512  ;;  %s1847_s22 = scalar_lea.hbm %s2525_s3, 1024 }
 0x395   : > { %p1844_p10 = scmp.ne.s32.totalorder %s2473_s4, %s1843_s8  ;;  %p1848_p1 = scmp.lt.u32.totalorder %s2473_s4, %s2525_s3 }
 0x396   : > { %p1849_p2 = scmp.lt.u32.totalorder %s1847_s22, %s1843_s8  ;;  %p1851_p4 = scmp.lt.u32.totalorder %s1843_s8, %s2473_s4 }
 0x397   : > { %p1845_p13 = pnand %p1844_p10, %p2015_p9 }
 0x398   : > { %p1850_p3 = por %p1849_p2, %p1848_p1 }
 0x399   : > { %p1846_p0 = pneg %p1845_p13 }
 0x39a   : > { %p1852_p5 = por %p1851_p4, %p1850_p3 }
 0x39c   : > { %p1853_p6 = pnand %p1852_p5, %p1846_p0 }
 0x39e   : > { %1856 = shalt.err (!%p1853_p6)
}
 0x39f   : > { %s1938_s18 = smov 128   ;;  %s1939_s24 = smov 8  }
 0x3a0   : > { %1655 = dma.vmem_to_hbm [thread:$0]  (%p2015_p9), %s2468_s19, 512, %s2473_s4, %s1321_s15, %s1938_s18, %s1938_s18, %s1939_s24  }
 0x3a1 PF: > { %s1351_s23 = sand.u32 1, %s1895_s12   ;;  %p1658_p7 = pnand %p1471_p12, %p2022_p11 }
 0x3a2   : > { %s1352_s0 = scalar_lea.sflag [#allocation4], %s1351_s23 }
 0x3a3   : > { %1890 = dma.done.wait (!%p1658_p7), %s1352_s0, 512  }
 0x3a4   : > { %1892 = vsyncadd (!%p1658_p7), %s1352_s0, 4294966784  ;;  %s22_s17 = sadd.s32 1, %s1915_s17   ;;  %s2532_s12 = smov %s1899_s13 }
 0x3a5   : > { %p19_p8 = scmp.ge.s32.totalorder %s22_s17, 4   ;;  %s2533_s13 = smov %s1903_s14 }
 0x3a6   : > { %s2534_s14 = smov %s2020_s26  ;;  %s2535_s15 = smov %s1911_s16 }
 0x3a7   : > { %s2536_s16 = smov %s2538_s20  ;;  %21 = sbr.rel (!%p19_p8) target bundleno = 10 (0xa), region = 116 }
 0x3ae   :  { %1357 = vsyncpa [#allocation3], 1 }
 0x3af   :  { %1359 = vsyncpa [#allocation3 + $0x1], 1 }
 0x3b0   :  { %1360 = vsyncpa [#allocation6], 1 }
 0x3b1   :  { %1362 = vsyncpa [#allocation6 + $0x1], 1 }
 0x3b2   :  { %1363 = vsyncpa [#allocation4], 1 }
 0x3b3   :  { %1365 = vsyncpa [#allocation4 + $0x1], 1 }

</bundles_post_ra>
